<compile_context>
chip_gen: v5e
topology: v5e:2x2
jax: 0.10.0
libtpu: 0.0.40
codegen_flags: <defaults>
</compile_context>

<pallas_src>
import functools

import jax
import jax.numpy as jnp
from jax import lax
from jax.experimental import pallas as pl
from jax.experimental.pallas import tpu as pltpu


def _masked_pool_mlp(feat_ref, mask_ref, w1_ref, b1_ref, w2_ref, b2_ref):
    """Masked mean-pool over particles + 2-layer ReLU MLP -> (TB, H) f32."""
    feat = feat_ref[...]                                    # (TB, C, P)
    mask = mask_ref[...]                                    # (TB, 1, P)

    pooled = jnp.sum(feat * mask, axis=-1)                  # (TB, C)
    count = jnp.maximum(jnp.sum(mask, axis=-1), 1.0)        # (TB, 1)
    # divide -> EUP approximate reciprocal (separate VLIW issue slot)
    pooled = pooled * pl.reciprocal(count, approx=True)

    h1 = jnp.dot(pooled, w1_ref[...],
                 preferred_element_type=jnp.float32) + b1_ref[...]
    h1 = jnp.maximum(h1, 0.0)
    h2 = jnp.dot(h1, w2_ref[...],
                 preferred_element_type=jnp.float32) + b2_ref[...]
    return jnp.maximum(h2, 0.0)


def _embed_kernel(feat_ref, mask_ref, w1_ref, b1_ref, w2_ref, b2_ref, emb_ref):
    # Specialized embed path: no head weights, no softmax/exp, only (B, H) out.
    emb_ref[...] = _masked_pool_mlp(feat_ref, mask_ref,
                                    w1_ref, b1_ref, w2_ref, b2_ref)


def _mog_kernel(K, feat_ref, mask_ref, w1_ref, b1_ref, w2_ref, b2_ref,
                wh_ref, bh_ref, out_ref):
    h2 = _masked_pool_mlp(feat_ref, mask_ref, w1_ref, b1_ref, w2_ref, b2_ref)

    # Fused MoG head: single (H, 3K) matmul, columns = [pi_logits | mu | log_sigma]
    head = jnp.dot(h2, wh_ref[...],
                   preferred_element_type=jnp.float32) + bh_ref[...]   # (TB, 3K)

    col = lax.broadcasted_iota(jnp.int32, head.shape, 1)
    is_pi = col < K
    is_sig = col >= 2 * K

    # Softmax restricted to the pi columns (mask-based; avoids sub-lane slices
    # and keeps the single output store fully dense).
    m = jnp.max(jnp.where(is_pi, head, -jnp.inf), axis=-1, keepdims=True)
    e = jnp.where(is_pi, jnp.exp(head - m), 0.0)
    denom = jnp.sum(e, axis=-1, keepdims=True)
    pi = e * pl.reciprocal(denom, approx=True)

    out_ref[...] = jnp.where(is_pi, pi,
                             jnp.where(is_sig, jnp.exp(head), head))


_TB_MAX = 512                     # large tile amortizes ~0.35 us/step overhead (v6e)
_VMEM_LIMIT = 32 * 1024 * 1024    # explicit scoped-VMEM budget; safe on v5e/v6e/v7x


def mog_mlp_forward(params, points, features, lorentz_vectors, mask, embed=False):
    """Mirrors MoG_MLPWrapper.forward(points, features, lorentz_vectors, mask, embed)."""
    del points, lorentz_vectors            # unused by the MLP baseline
    features = features.astype(jnp.float32)
    mask = mask.astype(jnp.float32)
    B, C, P = features.shape
    H = params["w2"].shape[1]
    K = params["wpi"].shape[1]

    # Batch tile: biggest tile whose double-buffered feature+mask slab stays well
    # inside the smallest per-generation scoped-VMEM budget (16 MiB on v5e,
    # 32 MiB default on v6e/v7x with 64 MiB physical on v7x).
    row_bytes = (C * P + P) * 4
    tb_fit = max(8, (8 * 1024 * 1024) // (2 * max(row_bytes, 1)))
    if B <= min(_TB_MAX, tb_fit):
        tb = B                                           # single/full-size tile
    else:
        tb = max(8, (min(_TB_MAX, tb_fit) // 8) * 8)     # keep sublane alignment
    grid = (pl.cdiv(B, tb),)

    # Streamed (double-buffered) batch tiles.
    feat_spec = pl.BlockSpec((tb, C, P), lambda i: (i, 0, 0))
    mask_spec = pl.BlockSpec((tb, 1, P), lambda i: (i, 0, 0))
    # Weights/biases: constant index_map -> DMA'd once, resident across the grid.
    w1_spec = pl.BlockSpec((C, H), lambda i: (0, 0))
    b1_spec = pl.BlockSpec((1, H), lambda i: (0, 0))
    w2_spec = pl.BlockSpec((H, H), lambda i: (0, 0))
    b2_spec = pl.BlockSpec((1, H), lambda i: (0, 0))

    cp = pltpu.CompilerParams(
        dimension_semantics=("parallel",),   # independent batch rows; 2 TCs on v7x
        vmem_limit_bytes=_VMEM_LIMIT)

    flops = 2 * B * (C * P + C * H + H * H + H * 3 * K)
    bytes_moved = 4 * (B * C * P + B * P + C * H + H * H + 3 * H * K
                       + B * (H if embed else 3 * K))
    cost = pl.CostEstimate(flops=int(flops),
                           transcendentals=int(4 * B * K),
                           bytes_accessed=int(bytes_moved))

    if embed:
        return pl.pallas_call(
            _embed_kernel,
            out_shape=jax.ShapeDtypeStruct((B, H), jnp.float32),
            grid_spec=pltpu.PrefetchScalarGridSpec(
                num_scalar_prefetch=0, grid=grid,
                in_specs=[feat_spec, mask_spec,
                          w1_spec, b1_spec, w2_spec, b2_spec],
                out_specs=pl.BlockSpec((tb, H), lambda i: (i, 0))),
            compiler_params=cp, cost_estimate=cost,
        )(features, mask,
          params["w1"], params["b1"], params["w2"], params["b2"])

    # Fused head weights: (H, 3K) / (1, 3K). Kernel writes pi|mu|sigma directly,
    # so there is no wrapper-side concatenate / extra HBM round trip.
    w_head = jnp.concatenate([params["wpi"], params["wmu"], params["wsg"]], axis=1)
    b_head = jnp.concatenate([params["bpi"], params["bmu"], params["bsg"]], axis=1)
    wh_spec = pl.BlockSpec((H, 3 * K), lambda i: (0, 0))
    bh_spec = pl.BlockSpec((1, 3 * K), lambda i: (0, 0))

    return pl.pallas_call(
        functools.partial(_mog_kernel, K),
        out_shape=jax.ShapeDtypeStruct((B, 3 * K), jnp.float32),
        grid_spec=pltpu.PrefetchScalarGridSpec(
            num_scalar_prefetch=0, grid=grid,
            in_specs=[feat_spec, mask_spec,
                      w1_spec, b1_spec, w2_spec, b2_spec,
                      wh_spec, bh_spec],
            out_specs=pl.BlockSpec((tb, 3 * K), lambda i: (i, 0))),
        compiler_params=cp, cost_estimate=cost,
    )(features, mask,
      params["w1"], params["b1"], params["w2"], params["b2"], w_head, b_head)


def _reference(params, features, mask, embed=False):
    pooled = jnp.sum(features * mask, axis=-1) / jnp.maximum(
        jnp.sum(mask, axis=-1), 1.0)
    h1 = jax.nn.relu(pooled @ params["w1"] + params["b1"])
    h2 = jax.nn.relu(h1 @ params["w2"] + params["b2"])
    if embed:
        return h2
    pi = jax.nn.softmax(h2 @ params["wpi"] + params["bpi"], axis=-1)
    mu = h2 @ params["wmu"] + params["bmu"]
    sig = jnp.exp(h2 @ params["wsg"] + params["bsg"])
    return jnp.concatenate([pi, mu, sig], axis=-1)


if __name__ == "__main__":
    # NOTE: real workloads should pad P to a multiple of 128 (lane axis) and C to
    # a multiple of 8 (sublane axis) for dense DMA/vregs; toy shapes kept small.
    B, C, P, H, K = 2, 4, 8, 32, 4   # batch, channels, particles, hidden, gaussians

    key = jax.random.PRNGKey(0)
    keys = jax.random.split(key, 10)

    features = jax.random.normal(keys[0], (B, C, P), jnp.float32)
    points = jax.random.normal(keys[1], (B, 2, P), jnp.float32)
    lorentz_vectors = jax.random.normal(keys[2], (B, 4, P), jnp.float32)
    mask = (jax.random.uniform(keys[3], (B, 1, P)) > 0.2).astype(jnp.float32)

    def linear_init(k, fan_in, fan_out):
        kw, kb = jax.random.split(k)
        s = 1.0 / (fan_in ** 0.5)
        w = jax.random.uniform(kw, (fan_in, fan_out), jnp.float32, -s, s)
        b = jax.random.uniform(kb, (1, fan_out), jnp.float32, -s, s)
        return w, b

    w1, b1 = linear_init(keys[4], C, H)
    w2, b2 = linear_init(keys[5], H, H)
    wpi, bpi = linear_init(keys[6], H, K)
    wmu, bmu = linear_init(keys[7], H, K)
    wsg, bsg = linear_init(keys[8], H, K)
    params = dict(w1=w1, b1=b1, w2=w2, b2=b2,
                  wpi=wpi, bpi=bpi, wmu=wmu, bmu=bmu, wsg=wsg, bsg=bsg)

    out = mog_mlp_forward(params, points, features, lorentz_vectors, mask,
                          embed=False)
    out = jax.block_until_ready(out)
    ref = _reference(params, features, mask, embed=False)
    assert out.shape == (B, 3 * K)
    # tolerance accounts for the EUP approximate reciprocals (pl.reciprocal approx=True)
    assert jnp.allclose(out, ref, atol=1e-2, rtol=1e-2), \
        f"max abs diff {jnp.max(jnp.abs(out - ref))}"

    emb = jax.block_until_ready(
        mog_mlp_forward(params, points, features, lorentz_vectors, mask,
                        embed=True))
    emb_ref = _reference(params, features, mask, embed=True)
    assert emb.shape == (B, H)
    assert jnp.allclose(emb, emb_ref, atol=1e-2, rtol=1e-2), \
        f"max abs diff {jnp.max(jnp.abs(emb - emb_ref))}"

    print("KERNEL_OK")
</pallas_src>

<mosaic_0001>
module attributes {stable_mosaic.version = 11 : i64} {
  func.func @_mog_kernel(%arg0: i32, %arg1: memref<2x4x8xf32, #tpu.memory_space<vmem>>, %arg2: memref<2x1x8xf32, #tpu.memory_space<vmem>>, %arg3: memref<4x32xf32, #tpu.memory_space<vmem>>, %arg4: memref<1x32xf32, #tpu.memory_space<vmem>>, %arg5: memref<32x32xf32, #tpu.memory_space<vmem>>, %arg6: memref<1x32xf32, #tpu.memory_space<vmem>>, %arg7: memref<32x12xf32, #tpu.memory_space<vmem>>, %arg8: memref<1x12xf32, #tpu.memory_space<vmem>>, %arg9: memref<2x12xf32, #tpu.memory_space<vmem>>) attributes {dimension_semantics = [#tpu.dimension_semantics<parallel>], iteration_bounds = array<i64: 1>, scalar_prefetch = 0 : i64, scratch_operands = 0 : i64, tpu.core_type = #tpu.core_type<tc>, window_params = [{transform_indices = @transform_0, window_bounds = array<i64: 2, 4, 8>}, {transform_indices = @transform_1, window_bounds = array<i64: 2, 1, 8>}, {pipeline_mode = #tpu.pipeline_mode<synchronous>, transform_indices = @transform_2, window_bounds = array<i64: 4, 32>}, {pipeline_mode = #tpu.pipeline_mode<synchronous>, transform_indices = @transform_3, window_bounds = array<i64: 1, 32>}, {pipeline_mode = #tpu.pipeline_mode<synchronous>, transform_indices = @transform_4, window_bounds = array<i64: 32, 32>}, {pipeline_mode = #tpu.pipeline_mode<synchronous>, transform_indices = @transform_5, window_bounds = array<i64: 1, 32>}, {pipeline_mode = #tpu.pipeline_mode<synchronous>, transform_indices = @transform_6, window_bounds = array<i64: 32, 12>}, {pipeline_mode = #tpu.pipeline_mode<synchronous>, transform_indices = @transform_7, window_bounds = array<i64: 1, 12>}, {transform_indices = @transform_8, window_bounds = array<i64: 2, 12>}]} {
    %c0 = arith.constant 0 : index
    %c0_0 = arith.constant 0 : index
    %c0_1 = arith.constant 0 : index
    %0 = vector.load %arg1[%c0, %c0_0, %c0_1] : memref<2x4x8xf32, #tpu.memory_space<vmem>>, vector<2x4x8xf32>
    %c0_2 = arith.constant 0 : index
    %c0_3 = arith.constant 0 : index
    %c0_4 = arith.constant 0 : index
    %1 = vector.load %arg2[%c0_2, %c0_3, %c0_4] : memref<2x1x8xf32, #tpu.memory_space<vmem>>, vector<2x1x8xf32>
    %2 = vector.broadcast %1 : vector<2x1x8xf32> to vector<2x4x8xf32>
    %3 = arith.mulf %0, %2 : vector<2x4x8xf32>
    %cst = arith.constant dense<0.000000e+00> : vector<2x4xf32>
    %4 = vector.multi_reduction <add>, %3, %cst [2] : vector<2x4x8xf32> to vector<2x4xf32>
    %cst_5 = arith.constant dense<0.000000e+00> : vector<2x1xf32>
    %5 = vector.multi_reduction <add>, %1, %cst_5 [2] : vector<2x1x8xf32> to vector<2x1xf32>
    %cst_6 = arith.constant 1.000000e+00 : f32
    %6 = vector.broadcast %cst_6 : f32 to vector<2x1xf32>
    %7 = arith.maximumf %5, %6 : vector<2x1xf32>
    %8 = tpu.reciprocal %7 {approx = true} : vector<2x1xf32> -> vector<2x1xf32>
    %9 = vector.broadcast %8 : vector<2x1xf32> to vector<2x4xf32>
    %10 = arith.mulf %4, %9 : vector<2x4xf32>
    %c0_7 = arith.constant 0 : index
    %c0_8 = arith.constant 0 : index
    %11 = vector.load %arg3[%c0_7, %c0_8] : memref<4x32xf32, #tpu.memory_space<vmem>>, vector<4x32xf32>
    %cst_9 = arith.constant dense<0.000000e+00> : vector<2x32xf32>
    %12 = tpu.matmul %10, %11, %cst_9 {dimension_numbers = #tpu.dot_dimension_numbers<[1], [0], [0], [1], [0, 0, 1, 1], [], []>} : vector<2x4xf32>, vector<4x32xf32>, vector<2x32xf32> -> vector<2x32xf32>
    %c0_10 = arith.constant 0 : index
    %c0_11 = arith.constant 0 : index
    %13 = vector.load %arg4[%c0_10, %c0_11] : memref<1x32xf32, #tpu.memory_space<vmem>>, vector<1x32xf32>
    %14 = vector.broadcast %13 : vector<1x32xf32> to vector<2x32xf32>
    %15 = arith.addf %12, %14 : vector<2x32xf32>
    %cst_12 = arith.constant 0.000000e+00 : f32
    %16 = vector.broadcast %cst_12 : f32 to vector<2x32xf32>
    %17 = arith.maximumf %15, %16 : vector<2x32xf32>
    %c0_13 = arith.constant 0 : index
    %c0_14 = arith.constant 0 : index
    %18 = vector.load %arg5[%c0_13, %c0_14] : memref<32x32xf32, #tpu.memory_space<vmem>>, vector<32x32xf32>
    %cst_15 = arith.constant dense<0.000000e+00> : vector<2x32xf32>
    %19 = tpu.matmul %17, %18, %cst_15 {dimension_numbers = #tpu.dot_dimension_numbers<[1], [0], [0], [1], [0, 0, 1, 1], [], []>} : vector<2x32xf32>, vector<32x32xf32>, vector<2x32xf32> -> vector<2x32xf32>
    %c0_16 = arith.constant 0 : index
    %c0_17 = arith.constant 0 : index
    %20 = vector.load %arg6[%c0_16, %c0_17] : memref<1x32xf32, #tpu.memory_space<vmem>>, vector<1x32xf32>
    %21 = vector.broadcast %20 : vector<1x32xf32> to vector<2x32xf32>
    %22 = arith.addf %19, %21 : vector<2x32xf32>
    %cst_18 = arith.constant 0.000000e+00 : f32
    %23 = vector.broadcast %cst_18 : f32 to vector<2x32xf32>
    %24 = arith.maximumf %22, %23 : vector<2x32xf32>
    %c0_19 = arith.constant 0 : index
    %c0_20 = arith.constant 0 : index
    %25 = vector.load %arg7[%c0_19, %c0_20] : memref<32x12xf32, #tpu.memory_space<vmem>>, vector<32x12xf32>
    %cst_21 = arith.constant dense<0.000000e+00> : vector<2x12xf32>
    %26 = tpu.matmul %24, %25, %cst_21 {dimension_numbers = #tpu.dot_dimension_numbers<[1], [0], [0], [1], [0, 0, 1, 1], [], []>} : vector<2x32xf32>, vector<32x12xf32>, vector<2x12xf32> -> vector<2x12xf32>
    %c0_22 = arith.constant 0 : index
    %c0_23 = arith.constant 0 : index
    %27 = vector.load %arg8[%c0_22, %c0_23] : memref<1x12xf32, #tpu.memory_space<vmem>>, vector<1x12xf32>
    %28 = vector.broadcast %27 : vector<1x12xf32> to vector<2x12xf32>
    %29 = arith.addf %26, %28 : vector<2x12xf32>
    %30 = tpu.iota {dimensions = array<i32: 1>} : vector<2x12xi32>
    %c4_i32 = arith.constant 4 : i32
    %31 = vector.broadcast %c4_i32 : i32 to vector<2x12xi32>
    %32 = arith.cmpi slt, %30, %31 : vector<2x12xi32>
    %c8_i32 = arith.constant 8 : i32
    %33 = vector.broadcast %c8_i32 : i32 to vector<2x12xi32>
    %34 = arith.cmpi sge, %30, %33 : vector<2x12xi32>
    %cst_24 = arith.constant 0xFF800000 : f32
    %35 = vector.broadcast %cst_24 : f32 to vector<2x12xf32>
    %36 = arith.select %32, %29, %35 : vector<2x12xi1>, vector<2x12xf32>
    %cst_25 = arith.constant dense<0xFF800000> : vector<2xf32>
    %37 = vector.multi_reduction <maximumf>, %36, %cst_25 [1] : vector<2x12xf32> to vector<2xf32>
    %38 = vector.shape_cast %37 : vector<2xf32> to vector<2x1xf32>
    %39 = vector.broadcast %38 : vector<2x1xf32> to vector<2x12xf32>
    %40 = arith.subf %29, %39 : vector<2x12xf32>
    %41 = math.exp %40 : vector<2x12xf32>
    %cst_26 = arith.constant 0.000000e+00 : f32
    %42 = vector.broadcast %cst_26 : f32 to vector<2x12xf32>
    %43 = arith.select %32, %41, %42 : vector<2x12xi1>, vector<2x12xf32>
    %cst_27 = arith.constant dense<0.000000e+00> : vector<2xf32>
    %44 = vector.multi_reduction <add>, %43, %cst_27 [1] : vector<2x12xf32> to vector<2xf32>
    %45 = vector.shape_cast %44 : vector<2xf32> to vector<2x1xf32>
    %46 = tpu.reciprocal %45 {approx = true} : vector<2x1xf32> -> vector<2x1xf32>
    %47 = vector.broadcast %46 : vector<2x1xf32> to vector<2x12xf32>
    %48 = arith.mulf %43, %47 : vector<2x12xf32>
    %49 = math.exp %29 : vector<2x12xf32>
    %50 = arith.select %34, %49, %29 : vector<2x12xi1>, vector<2x12xf32>
    %51 = arith.select %32, %48, %50 : vector<2x12xi1>, vector<2x12xf32>
    %c0_28 = arith.constant 0 : index
    %c0_29 = arith.constant 0 : index
    %52 = vector.load %arg9[%c0_28, %c0_29] : memref<2x12xf32, #tpu.memory_space<vmem>>, vector<2x12xf32>
    tpu.vector_store %arg9[%c0_28, %c0_29], %51 {strides = array<i32>} : memref<2x12xf32, #tpu.memory_space<vmem>>, vector<2x12xf32>,
    return
  }
  func.func @transform_0(%arg0: i32) -> (i32, i32, i32) {
    %c0_i32 = arith.constant 0 : i32
    %c0_i32_0 = arith.constant 0 : i32
    %c0_i32_1 = arith.constant 0 : i32
    return %arg0, %c0_i32, %c0_i32_0 : i32, i32, i32
  }
  func.func @transform_1(%arg0: i32) -> (i32, i32, i32) {
    %c0_i32 = arith.constant 0 : i32
    %c0_i32_0 = arith.constant 0 : i32
    %c0_i32_1 = arith.constant 0 : i32
    return %arg0, %c0_i32, %c0_i32_0 : i32, i32, i32
  }
  func.func @transform_2(%arg0: i32) -> (i32, i32) {
    %c0_i32 = arith.constant 0 : i32
    %c0_i32_0 = arith.constant 0 : i32
    %c0_i32_1 = arith.constant 0 : i32
    return %c0_i32, %c0_i32_0 : i32, i32
  }
  func.func @transform_3(%arg0: i32) -> (i32, i32) {
    %c0_i32 = arith.constant 0 : i32
    %c0_i32_0 = arith.constant 0 : i32
    %c0_i32_1 = arith.constant 0 : i32
    return %c0_i32, %c0_i32_0 : i32, i32
  }
  func.func @transform_4(%arg0: i32) -> (i32, i32) {
    %c0_i32 = arith.constant 0 : i32
    %c0_i32_0 = arith.constant 0 : i32
    %c0_i32_1 = arith.constant 0 : i32
    return %c0_i32, %c0_i32_0 : i32, i32
  }
  func.func @transform_5(%arg0: i32) -> (i32, i32) {
    %c0_i32 = arith.constant 0 : i32
    %c0_i32_0 = arith.constant 0 : i32
    %c0_i32_1 = arith.constant 0 : i32
    return %c0_i32, %c0_i32_0 : i32, i32
  }
  func.func @transform_6(%arg0: i32) -> (i32, i32) {
    %c0_i32 = arith.constant 0 : i32
    %c0_i32_0 = arith.constant 0 : i32
    %c0_i32_1 = arith.constant 0 : i32
    return %c0_i32, %c0_i32_0 : i32, i32
  }
  func.func @transform_7(%arg0: i32) -> (i32, i32) {
    %c0_i32 = arith.constant 0 : i32
    %c0_i32_0 = arith.constant 0 : i32
    %c0_i32_1 = arith.constant 0 : i32
    return %c0_i32, %c0_i32_0 : i32, i32
  }
  func.func @transform_8(%arg0: i32) -> (i32, i32) {
    %c0_i32 = arith.constant 0 : i32
    %c0_i32_0 = arith.constant 0 : i32
    return %arg0, %c0_i32 : i32, i32
  }
}

</mosaic_0001>

<bundles_post_ra>
// kernel: tpu_custom_call.1
= control target key start
LH: loop header
LB: loop body
LE: loop exit
PB: predicated region body
PF: predicated region fallthrough
CT: control target
= control target key end

     0   :  { %vm49_vm0 = vcmask 57344   ;;  %vm42_vm1 = vcmask 60416   ;;  %s370_s0 = inlined_call_operand.vmem [shape: f32[2,4,8], index: 0, kind: input, shape index: {}]   ;;  %s371_s1 = inlined_call_operand.vmem [shape: f32[2,1,8], index: 1, kind: input, shape index: {}]   ;;  %s372_s2 = inlined_call_operand.vmem [shape: f32[4,32], index: 2, kind: input, shape index: {}]   ;;  %s373_s3 = inlined_call_operand.vmem [shape: f32[1,32], index: 3, kind: input, shape index: {}]   ;;  %s374_s4 = inlined_call_operand.vmem [shape: f32[32,32], index: 4, kind: input, shape index: {}]   ;;  %s375_s5 = inlined_call_operand.vmem [shape: f32[1,32], index: 5, kind: input, shape index: {}]   ;;  %s376_s6 = inlined_call_operand.vmem [shape: f32[32,12], index: 6, kind: input, shape index: {}]   ;;  %s377_s7 = inlined_call_operand.vmem [shape: f32[1,12], index: 7, kind: input, shape index: {}]   ;;  %s378_s8 = inlined_call_operand.hbm [shape: f32[2,12], index: 8, kind: output, shape index: {}]  }
   0x1   :  { %v32_v0 = vld [vmem:[%s371_s1] sm:$0x1]  ;;  %v212_v3 = vld [vmem:[%s371_s1 + $0x1] ss:$0 sm:$0xff]  ;;  %v31_v7 = vld [vmem:[%s370_s0 + $0x4] sm:$0xf] }
   0x2   :  { %v211_v1 = vld [vmem:[%s371_s1] ss:$0 sm:$0xff]  ;;  %v50_v2 = vsel %vm49_vm0, %v32_v0, 0.0  ;;  %v33_v6 = vld [vmem:[%s371_s1 + $0x1] sm:$0x1] }
   0x3   :  { %51 = vadd.xlane.f32.xlu0 %v50_v2  ;;  %v30_v4 = vld [vmem:[%s370_s0] sm:$0xf] }
   0x4   :  { %v40_v5 = vmul.f32 %v211_v1, %v30_v4 }
   0x5   :  { %13 = vsyncpa [#allocation3], 0  ;;  %v53_v9 = vsel %vm49_vm0, %v33_v6, 0.0  ;;  %v41_v10 = vmul.f32 %v212_v3, %v31_v7  ;;  %v64_v12 = vld [vmem:[%s372_s2] sm:$0xf]  ;;  %vm80_vm2 = vcmask 1043456   ;;  %v71_v21 = vlaneseq }
   0x6   :  { %v43_v8 = vsel %vm42_vm1, %v40_v5, 0.0  ;;  %206 = vmatpush.msk.msra.mxu0 %vm80_vm2, %v64_v12  ;;  %v108_v13 = vld [vmem:[%s374_s4 + $0x18] sm:$0xff]  ;;  %vm75_vm3 = vcmask 1041409   ;;  %vm77_vm4 = vcmask 31744   ;;  %v107_v31 = vld [vmem:[%s374_s4 + $0x10] sm:$0xff]  ;;  %v106_v32 = vld [vmem:[%s374_s4 + $0x8] sm:$0xff] }
   0x7   :  { %44 = vadd.xlane.f32.xlu1 %v43_v8  ;;  %v46_v11 = vsel %vm42_vm1, %v41_v10, 0.0  ;;  %129 = vmatpush.msra.mxu1 %v108_v13  ;;  %v322_v25 = vand.u32 127, %v71_v21  ;;  %v105_v33 = vld [vmem:[%s374_s4] sm:$0xff]  ;;  %v141_v34 = vld [vmem:[%s376_s6 + $0x18] sm:$0xff]  ;;  %vm113_vm5 = vcmask 261120   ;;  %v140_v39 = vld [vmem:[%s376_s6 + $0x10] sm:$0xff] }
   0x8   :  { %161 = vmatpush.msra.mxu2 %v141_v34  ;;  %v213_v35 = vld [vmem:[%s373_s3] ss:$0 sm:$0xff]  ;;  %v139_v40 = vld [vmem:[%s376_s6 + $0x8] sm:$0xff]  ;;  %vm172_vm7 = vcmask 91136   ;;  %s197_s15 = sshll.u32 %s378_s8, 4  ;;  %s198_s15 = int_to_ptr.hbm [resolvable:$true] %s197_s15 }
   0x9   :  { %130 = vmatpush.msra.mxu1 %v107_v31  ;;  %v138_v41 = vld [vmem:[%s376_s6] sm:$0xff]  ;;  %vm169_vm6 = vcmp.lt.s32.totalorder %v322_v25, 4  ;;  %vm170_vm8 = vcmp.ge.s32.totalorder %v322_v25, 8 }
   0xa   :  { %162 = vmatpush.msra.mxu2 %v140_v39  ;;  %v214_v42 = vld [vmem:[%s375_s5] ss:$0 sm:$0xff]  ;;  %s252_s5 = smov [#allocation2]  }
   0xb   :  { %54 = vadd.xlane.f32.xlu0 %v53_v9  ;;  %131 = vmatpush.msra.mxu1 %v106_v32  ;;  %v215_v46 = vld [vmem:[%s377_s7] ss:$0 sm:$0xff]  ;;  %s195_s6 = sshll.u32 %s252_s5, 4  ;;  %s196_s6 = int_to_ptr.vmem [resolvable:$true] %s195_s6 }
   0xc   :  { %163 = vmatpush.msra.mxu2 %v139_v40 }
   0xd   :  { %132 = vmatpush.msra.mxu1 %v105_v33 }
   0xe   :  { %164 = vmatpush.msra.mxu2 %v138_v41 }
   0xf   :  { %47 = vadd.xlane.f32.xlu1 %v46_v11 }
  0x76   :  { %v52_v14 = vpop.xlane.xlu0 %51 }
  0x77   :  { %v56_v15 = vmax.f32 %v52_v14, 1.0 }
  0x79   :  { %216 = vrcp.f32 %v56_v15 }
  0x7a   :  { %v45_v16 = vpop.xlane.xlu1 %44 }
  0x7e   :  { %v55_v17 = vpop.xlane.xlu0 %54 }
  0x7f   :  { %v57_v18 = vmax.f32 %v55_v17, 1.0  ;;  %v217_v19 = vpop.eup %216 }
  0x80   :  { %v60_v20 = vperm.slane %v217_v19, 0 }
  0x81   :  { %218 = vrcp.f32 %v57_v18 }
  0x82   :  { %v48_v23 = vpop.xlane.xlu1 %47  ;;  %v62_v26 = vmul.f32 %v60_v20, %v45_v16 }
  0x84   :  { %v73_v28 = vperm.slane %v62_v26, %v322_v25 }
  0x87   :  { %v219_v22 = vpop.eup %218 }
  0x88   :  { %v61_v24 = vperm.slane %v219_v22, 0 }
  0x8a   :  { %v63_v27 = vmul.f32 %v61_v24, %v48_v23 }
  0x8c   :  { %v74_v29 = vperm.slane %v63_v27, %v322_v25 }
  0x8e   :  { %v76_v30 = vsel %vm75_vm3, %v74_v29, %v73_v28 }
  0x8f   :  { %207 = vmatmul.msk.f32.vlgmr.msra.gmra.mxu0 %vm77_vm4, %v76_v30 }
 0x10c   :  { %v101_v36 = vpop.f32.mrf.mxu0 }
 0x10d   :  { %v102_v37 = vadd.f32 %v213_v35, %v101_v36 }
 0x10f   :  { %v104_v38 = vmax.f32 %v102_v37, 0.0 }
 0x111   :  { %208 = vmatmul.msk.f32.vlgmr.msra.gmra.mxu1 %vm113_vm5, %v104_v38 }
 0x18e   :  { %v134_v43 = vpop.f32.mrf.mxu1 }
 0x18f   :  { %v135_v44 = vadd.f32 %v214_v42, %v134_v43 }
 0x191   :  { %v137_v45 = vmax.f32 %v135_v44, 0.0 }
 0x193   :  { %209 = vmatmul.msk.f32.vlgmr.msra.gmra.mxu2 %vm113_vm5, %v137_v45 }
 0x216   :  { %v166_v47 = vpop.f32.mrf.mxu2 }
 0x217   :  { %v167_v48 = vadd.f32 %v215_v46, %v166_v47 }
 0x219   :  { %v171_v49 = vsel %vm169_vm6, %v167_v48, -inf  ;;  %v185_v57 = vmul.f32 1.442695, %v167_v48 }
 0x21a   :  { %v173_v50 = vsel %vm172_vm7, %v171_v49, -inf }
 0x21b   :  { %174 = vmax.xlane.f32.xlu2 %v173_v50 }
 0x28e   :  { %v175_v51 = vpop.xlane.xlu2 %174 }
 0x28f   :  { %v176_v52 = vsub.f32 %v167_v48, %v175_v51 }
 0x291   :  { %v177_v53 = vmul.f32 1.442695, %v176_v52 }
 0x293   :  { %220 = vpow2.f32 %v177_v53 }
 0x294   :  { %222 = vpow2.f32 %v185_v57 }
 0x299   :  { %v221_v54 = vpop.eup %220 }
 0x29a   :  { %v179_v55 = vsel %vm169_vm6, %v221_v54, 0.0  ;;  %v223_v59 = vpop.eup %222 }
 0x29b   :  { %v180_v56 = vsel %vm172_vm7, %v179_v55, 0.0  ;;  %v187_v62 = vsel %vm170_vm8, %v223_v59, %v167_v48 }
 0x29c   :  { %181 = vadd.xlane.f32.xlu2 %v180_v56 }
 0x30f   :  { %v182_v58 = vpop.xlane.xlu2 %181 }
 0x310   :  { %224 = vrcp.f32 %v182_v58 }
 0x316   :  { %v225_v60 = vpop.eup %224 }
 0x317   :  { %v184_v61 = vmul.f32 %v225_v60, %v179_v55 }
 0x319   :  { %v188_v63 = vsel %vm169_vm6, %v184_v61, %v187_v62 }
 0x31a   :  { %189 = vst.msk [vmem:[#allocation2] sm:$0x3] %vm172_vm7, %v188_v63 }
 0x31b   :  { %200 = dma.vmem_to_hbm [thread:$0]  %s196_s6, 32, %s198_s15, [#allocation3]  }
 0x31c   :  { %250 = dma.done.wait [#allocation3], 32  }
 0x31d   :  { %251 = vsyncadd [#allocation3], 4294967264 }
 0x31e   :  { %205 = vsyncpa [#allocation3], 1 }

</bundles_post_ra>
